<compile_context>
chip_gen: v7x
topology: tpu7x:2x2x1
jax: 0.10.0
libtpu: 0.0.40
codegen_flags: <defaults>
</compile_context>

<pallas_src>
import functools

import jax
import jax.numpy as jnp
from jax.experimental import pallas as pl
from jax.experimental.pallas import tpu as pltpu

_LANE = 128
_SUB = 8
_TARGET_BLOCK_BYTES = 4 * 1024 * 1024   # HBM bytes per input per grid step
_CHUNK_ROWS = 1024                      # in-kernel compute chunk (512 KiB f32)
_VMEM_LIMIT_BYTES = 32 * 1024 * 1024


def _n_split_default():
    """Use a 2-way leading 'parallel' split only on 2-TensorCore chips (v7x)."""
    try:
        kind = jax.devices()[0].device_kind.lower()
    except Exception:
        return 1
    return 2 if "v7" in kind else 1


def _mse_partial_kernel(t_ref, x_ref, out_ref, acc_ref, *,
                        rows, block_rows, chunk_rows, acc_rows,
                        tiles_per_split, needs_mask):
    j = pl.program_id(1)
    num_chunks = block_rows // chunk_rows

    @pl.when(j == 0)
    def _():
        acc_ref[...] = jnp.zeros_like(acc_ref)

    def accum_chunk(r0, valid_rows=None):
        # Upcast to f32 inside the kernel only (bf16 inputs stream at bf16 width).
        d = (t_ref[pl.ds(r0, chunk_rows), :].astype(jnp.float32)
             - x_ref[pl.ds(r0, chunk_rows), :].astype(jnp.float32))
        dd = d * d
        if valid_rows is not None:
            ridx = jax.lax.broadcasted_iota(jnp.int32, dd.shape, 0)
            dd = jnp.where(ridx < valid_rows, dd, 0.0)
        # Fold (chunk_rows, 128) -> (acc_rows, 128): layout-preserving reshape
        # + pure VPU adds; no per-step cross-lane traffic.
        acc_ref[...] += jnp.sum(
            dd.reshape(chunk_rows // acc_rows, acc_rows, _LANE), axis=0)

    if needs_mask:
        tile = pl.program_id(0) * tiles_per_split + j
        row0 = tile * block_rows
        # Tail tile, or fully out-of-range duplicate tile (its DMA was clamped
        # in the index_map; the mask zeroes its whole contribution).
        is_edge = (row0 + block_rows) > rows

        @pl.when(jnp.logical_not(is_edge))
        def _():
            @pl.loop(0, num_chunks)
            def _(c):
                accum_chunk(pl.multiple_of(c * chunk_rows, chunk_rows))

        @pl.when(is_edge)
        def _():
            @pl.loop(0, num_chunks)
            def _(c):
                r0 = pl.multiple_of(c * chunk_rows, chunk_rows)
                accum_chunk(r0, valid_rows=rows - row0 - r0)
    else:
        @pl.loop(0, num_chunks)
        def _(c):
            accum_chunk(pl.multiple_of(c * chunk_rows, chunk_rows))

    @pl.when(j == pl.num_programs(1) - 1)
    def _():
        # Per-split lane partials (lane-dense 128-wide store); final reduce in
        # the wrapper.
        out_ref[...] = jnp.sum(
            acc_ref[...], axis=0, keepdims=True).reshape(1, 1, _LANE)


@functools.partial(jax.jit, static_argnames=("block_rows", "n_split"))
def content_loss_forward(target, x, *, block_rows=None, n_split=None):
    """Returns (input_passthrough, mse_loss_scalar) — mirrors Content_Loss.forward."""
    assert target.shape == x.shape, "target and input must match (as in F.mse_loss)"
    n_elem = x.size
    assert n_elem > 0

    flat_t = target.reshape(-1)
    flat_x = x.reshape(-1)

    # Lane-align. Only numel % 128 != 0 pays an O(N) pad copy now; for tiny
    # inputs we additionally align rows to 8 so every tile folds cleanly.
    pad = (-n_elem) % _LANE
    rows = (n_elem + pad) // _LANE
    if rows < _CHUNK_ROWS and rows % _SUB != 0:
        pad = (-n_elem) % (_LANE * _SUB)
        rows = (n_elem + pad) // _LANE
    if pad:
        # TODO(synk): a 1-D element-masked BlockSpec would remove this O(N)
        # copy for truly ragged element counts; feature maps are normally
        # 128-aligned so this path is rare.
        flat_t = jnp.pad(flat_t, (0, pad))
        flat_x = jnp.pad(flat_x, (0, pad))

    t2 = flat_t.reshape(rows, _LANE)
    x2 = flat_x.reshape(rows, _LANE)

    # dtype-aware tile size: ~4 MiB of input per operand per grid step.
    itemsize = max(jnp.dtype(target.dtype).itemsize, jnp.dtype(x.dtype).itemsize)
    target_rows = (_TARGET_BLOCK_BYTES // (_LANE * itemsize)
                   if block_rows is None else block_rows)
    target_rows = max(_SUB, (target_rows // _SUB) * _SUB)   # multiple of 8
    if rows >= target_rows:
        block_rows = target_rows
    elif rows >= _CHUNK_ROWS:
        block_rows = _CHUNK_ROWS
    else:
        block_rows = rows                                   # single full-array tile
    chunk_rows = _CHUNK_ROWS if block_rows % _CHUNK_ROWS == 0 else block_rows
    acc_rows = 64 if chunk_rows % 64 == 0 else _SUB

    total_tiles = pl.cdiv(rows, block_rows)
    if n_split is None:
        n_split = _n_split_default()
    if total_tiles < n_split:
        n_split = 1
    tiles_per_split = pl.cdiv(total_tiles, n_split)
    needs_mask = (n_split * tiles_per_split * block_rows) != rows
    max_tile = total_tiles - 1

    if n_split == 1:
        in_map = lambda c, j: (j, 0)
    else:
        # Clamp so no DMA block starts out of bounds; clamped / duplicate tiles
        # are zeroed in-kernel via the is_edge mask branch.
        in_map = lambda c, j: (jnp.minimum(c * tiles_per_split + j, max_tile), 0)

    partials = pl.pallas_call(
        functools.partial(
            _mse_partial_kernel,
            rows=rows,
            block_rows=block_rows,
            chunk_rows=chunk_rows,
            acc_rows=acc_rows,
            tiles_per_split=tiles_per_split,
            needs_mask=needs_mask),
        out_shape=jax.ShapeDtypeStruct((n_split, 1, _LANE), jnp.float32),
        grid_spec=pltpu.PrefetchScalarGridSpec(
            num_scalar_prefetch=0,
            grid=(n_split, tiles_per_split),
            in_specs=[
                pl.BlockSpec((block_rows, _LANE), in_map),
                pl.BlockSpec((block_rows, _LANE), in_map),
            ],
            out_specs=pl.BlockSpec((1, 1, _LANE), lambda c, j: (c, 0, 0)),
            scratch_shapes=[pltpu.VMEM((acc_rows, _LANE), jnp.float32)],
        ),
        compiler_params=pltpu.CompilerParams(
            dimension_semantics=("parallel", "arbitrary"),
            vmem_limit_bytes=_VMEM_LIMIT_BYTES,
        ),
        cost_estimate=pl.CostEstimate(
            flops=3 * n_elem,
            transcendentals=0,
            bytes_accessed=(t2.size * t2.dtype.itemsize
                            + x2.size * x2.dtype.itemsize
                            + n_split * _LANE * 4),
        ),
    )(t2, x2)

    loss = jnp.sum(partials) * jnp.float32(1.0 / n_elem)
    # The module returns `input` unchanged; the loss is the stored side value.
    return x, loss


class ContentLossPallas:
    """Tiny wrapper mimicking the nn.Module interface."""

    def __init__(self, target):
        self.target = jax.lax.stop_gradient(target)  # .detach()
        self.loss = None

    def __call__(self, x):
        out, loss = content_loss_forward(self.target, x)
        self.loss = loss
        return out


if __name__ == "__main__":
    key = jax.random.PRNGKey(0)

    def _run_case(idx, shape, dtype=jnp.float32):
        k_t, k_x = jax.random.split(jax.random.fold_in(key, idx))
        target = jax.random.normal(k_t, shape, dtype=jnp.float32).astype(dtype)
        x = jax.random.normal(k_x, shape, dtype=jnp.float32).astype(dtype)

        module = ContentLossPallas(target)
        out = module(x)
        out = jax.block_until_ready(out)
        loss = jax.block_until_ready(module.loss)

        ref = jnp.mean((target.astype(jnp.float32) - x.astype(jnp.float32)) ** 2)
        assert out.shape == x.shape and out.dtype == x.dtype
        assert bool(jnp.all(out == x)), "forward must return input unchanged"
        assert jnp.allclose(loss, ref, rtol=1e-5, atol=1e-6), (shape, loss, ref)

    # Primary case: small NCHW feature map (typical Content_Loss usage).
    _run_case(0, (2, 4, 16, 16))
    # Larger map: multi-tile grid + masked tail tile + in-kernel chunk loop.
    _run_case(1, (1, 65, 128, 128))
    # Ragged element count (numel % 128 != 0): exercises the pad fallback.
    _run_case(2, (3, 5, 8, 8))

    print("KERNEL_OK")
</pallas_src>

<mosaic_0001>
module attributes {stable_mosaic.version = 11 : i64} {
  func.func @_mse_partial_kernel(%arg0: i32, %arg1: i32, %arg2: memref<16x128xf32, #tpu.memory_space<vmem>>, %arg3: memref<16x128xf32, #tpu.memory_space<vmem>>, %arg4: memref<1x1x128xf32, #tpu.memory_space<vmem>>, %arg5: memref<8x128xf32, #tpu.memory_space<vmem>>) attributes {dimension_semantics = [#tpu.dimension_semantics<parallel>, #tpu.dimension_semantics<arbitrary>], iteration_bounds = array<i64: 1, 1>, scalar_prefetch = 0 : i64, scratch_operands = 1 : i64, tpu.core_type = #tpu.core_type<tc>, window_params = [{transform_indices = @transform_0, window_bounds = array<i64: 16, 128>}, {transform_indices = @transform_1, window_bounds = array<i64: 16, 128>}, {transform_indices = @transform_2, window_bounds = array<i64: 1, 1, 128>}]} {
    %c0_i32 = arith.constant 0 : i32
    %0 = arith.cmpi eq, %arg1, %c0_i32 : i32
    %1 = arith.extui %0 : i1 to i32
    %c0_i32_0 = arith.constant 0 : i32
    %2 = arith.cmpi ne, %1, %c0_i32_0 : i32
    scf.if %2 {
      %cst_11 = arith.constant 0.000000e+00 : f32
      %21 = vector.broadcast %cst_11 : f32 to vector<8x128xf32>
      %c0_12 = arith.constant 0 : index
      %c0_13 = arith.constant 0 : index
      %22 = vector.load %arg5[%c0_12, %c0_13] : memref<8x128xf32, #tpu.memory_space<vmem>>, vector<8x128xf32>
      tpu.vector_store %arg5[%c0_12, %c0_13], %21 {strides = array<i32>} : memref<8x128xf32, #tpu.memory_space<vmem>>, vector<8x128xf32>,
    } else {
    }
    %c0_i32_1 = arith.constant 0 : i32
    %c1_i32 = arith.constant 1 : i32
    %3 = arith.muli %c0_i32_1, %c1_i32 : i32
    %c0_i32_2 = arith.constant 0 : i32
    %4 = arith.addi %c0_i32_2, %3 : i32
    %c16_i32 = arith.constant 16 : i32
    %5 = arith.muli %4, %c16_i32 : i32
    %6 = tpu.assume_multiple %5, 16 : i32
    %7 = arith.index_cast %6 : i32 to index
    %c0 = arith.constant 0 : index
    %8 = vector.load %arg2[%7, %c0] : memref<16x128xf32, #tpu.memory_space<vmem>>, vector<16x128xf32>
    %9 = arith.index_cast %6 : i32 to index
    %c0_3 = arith.constant 0 : index
    %10 = vector.load %arg3[%9, %c0_3] : memref<16x128xf32, #tpu.memory_space<vmem>>, vector<16x128xf32>
    %11 = arith.subf %8, %10 : vector<16x128xf32>
    %12 = arith.mulf %11, %11 : vector<16x128xf32>
    %c0_4 = arith.constant 0 : index
    %c0_5 = arith.constant 0 : index
    %13 = vector.load %arg5[%c0_4, %c0_5] : memref<8x128xf32, #tpu.memory_space<vmem>>, vector<8x128xf32>
    %14 = vector.shape_cast %12 : vector<16x128xf32> to vector<2x8x128xf32>
    %cst = arith.constant dense<0.000000e+00> : vector<8x128xf32>
    %15 = vector.multi_reduction <add>, %14, %cst [0] : vector<2x8x128xf32> to vector<8x128xf32>
    %16 = arith.addf %13, %15 : vector<8x128xf32>
    %c0_6 = arith.constant 0 : index
    %c0_7 = arith.constant 0 : index
    %17 = vector.load %arg5[%c0_6, %c0_7] : memref<8x128xf32, #tpu.memory_space<vmem>>, vector<8x128xf32>
    tpu.vector_store %arg5[%c0_6, %c0_7], %16 {strides = array<i32>} : memref<8x128xf32, #tpu.memory_space<vmem>>, vector<8x128xf32>,
    %c1_i32_8 = arith.constant 1 : i32
    %c0_i32_9 = arith.constant 0 : i32
    %18 = arith.cmpi eq, %arg1, %c0_i32_9 : i32
    %19 = arith.extui %18 : i1 to i32
    %c0_i32_10 = arith.constant 0 : i32
    %20 = arith.cmpi ne, %19, %c0_i32_10 : i32
    scf.if %20 {
      %c0_11 = arith.constant 0 : index
      %c0_12 = arith.constant 0 : index
      %21 = vector.load %arg5[%c0_11, %c0_12] : memref<8x128xf32, #tpu.memory_space<vmem>>, vector<8x128xf32>
      %cst_13 = arith.constant dense<0.000000e+00> : vector<128xf32>
      %22 = vector.multi_reduction <add>, %21, %cst_13 [0] : vector<8x128xf32> to vector<128xf32>
      %23 = vector.shape_cast %22 : vector<128xf32> to vector<1x128xf32>
      %24 = vector.shape_cast %23 : vector<1x128xf32> to vector<1x1x128xf32>
      %c0_14 = arith.constant 0 : index
      %c0_15 = arith.constant 0 : index
      %c0_16 = arith.constant 0 : index
      %25 = vector.load %arg4[%c0_14, %c0_15, %c0_16] : memref<1x1x128xf32, #tpu.memory_space<vmem>>, vector<1x1x128xf32>
      tpu.vector_store %arg4[%c0_14, %c0_15, %c0_16], %24 {strides = array<i32>} : memref<1x1x128xf32, #tpu.memory_space<vmem>>, vector<1x1x128xf32>,
    } else {
    }
    return
  }
  func.func @transform_0(%arg0: i32, %arg1: i32) -> (i32, i32) {
    %c0_i32 = arith.constant 0 : i32
    %c0_i32_0 = arith.constant 0 : i32
    return %arg1, %c0_i32 : i32, i32
  }
  func.func @transform_1(%arg0: i32, %arg1: i32) -> (i32, i32) {
    %c0_i32 = arith.constant 0 : i32
    %c0_i32_0 = arith.constant 0 : i32
    return %arg1, %c0_i32 : i32, i32
  }
  func.func @transform_2(%arg0: i32, %arg1: i32) -> (i32, i32, i32) {
    %c0_i32 = arith.constant 0 : i32
    %c0_i32_0 = arith.constant 0 : i32
    %c0_i32_1 = arith.constant 0 : i32
    return %arg0, %c0_i32, %c0_i32_0 : i32, i32, i32
  }
}

</mosaic_0001>

<bundles_post_ra>
// kernel: content_loss_forward.1
= control target key start
LH: loop header
LB: loop body
LE: loop exit
PB: predicated region body
PF: predicated region fallthrough
CT: control target
= control target key end

     0   :  { %s73_s0 = inlined_call_operand.vmem [shape: f32[16,128], index: 0, kind: input, shape index: {}]   ;;  %s74_s1 = inlined_call_operand.vmem [shape: f32[16,128], index: 1, kind: input, shape index: {}]   ;;  %s75_s2 = inlined_call_operand.vmem [shape: f32[1,1,128], index: 2, kind: output, shape index: {}]  }
   0x1   :  { %v16_v0 = vld [vmem:[%s73_s0] sm:$0xff]  ;;  %v17_v1 = vld [vmem:[%s73_s0 + $0x8] sm:$0xff] }
   0x2   :  { %v18_v2 = vld [vmem:[%s74_s1] sm:$0xff]  ;;  %v19_v3 = vld [vmem:[%s74_s1 + $0x8] sm:$0xff] }
   0x3   :  { %v20_v4 = vsub.f32 %v16_v0, %v18_v2  ;;  %v21_v5 = vsub.f32 %v17_v1, %v19_v3 }
   0x5   :  { %v22_v6 = vmul.f32 %v20_v4, %v20_v4  ;;  %v23_v7 = vmul.f32 %v21_v5, %v21_v5 }
   0x7   :  { %v25_v8 = vadd.f32 %v23_v7, %v22_v6 }
   0x9   :  { %v32_v9 = vrot.slane %v25_v8, 4 }
   0xb   :  { %v33_v10 = vadd.f32 %v32_v9, %v25_v8 }
   0xd   :  { %v34_v11 = vrot.slane %v33_v10, 2 }
   0xf   :  { %v35_v12 = vadd.f32 %v34_v11, %v33_v10 }
  0x11   :  { %v36_v13 = vrot.slane %v35_v12, 1 }
  0x13   :  { %v37_v14 = vadd.f32 %v36_v13, %v35_v12 }
  0x15   :  { %38 = vst [vmem:[%s75_s2] sm:$0x1] %v37_v14 }

</bundles_post_ra>
